<compile_context>
chip_gen: v7x
topology: tpu7x:2x2x1
jax: 0.10.0
libtpu: 0.0.40
codegen_flags: <defaults>
</compile_context>

<pallas_src>
import math
from functools import partial

import jax
import jax.numpy as jnp
from jax.experimental import pallas as pl
from jax.experimental.pallas import tpu as pltpu


def _round_up(x, m):
    return ((x + m - 1) // m) * m


_VMEM_HEADROOM = 16 << 20  # leave room for compiler-internal scratch / spill


def _vmem_capacity_bytes():
    """Per-TensorCore VMEM capacity; conservative (v7x = 64 MiB) fallback."""
    try:
        return int(pltpu.get_tpu_info().vmem_capacity_bytes)
    except Exception:
        return 64 << 20


def _vmem_footprint_bytes(tm, padded):
    """Estimated VMEM bytes for one grid step with all weights resident."""
    num_layers = len(padded) - 1
    w_bytes = sum(padded[i] * padded[i + 1] * 2 for i in range(num_layers))  # bf16, x1 (Buffered(1))
    b_bytes = sum(padded[i + 1] * 4 for i in range(num_layers))              # f32,  x1
    x_bytes = tm * padded[0] * 2 * 2          # bf16 input tile, double-buffered
    o_bytes = tm * padded[-1] * 4 * 2         # f32 output tile, double-buffered
    w_max = max(padded[1:])
    act_bytes = tm * w_max * (4 + 2)          # widest f32 accumulator + bf16 h (spill bound)
    return w_bytes + b_bytes + x_bytes + o_bytes + act_bytes


def _resident_spec(shape):
    """Constant weight/bias block, resident across all grid steps.

    Single-buffer it: the index_map never changes so there is nothing to
    pipeline, and double-buffering would just double its VMEM footprint.
    """
    idx = lambda i: (0, 0)
    try:
        return pl.BlockSpec(shape, idx, pipeline_mode=pl.Buffered(1))
    except TypeError:  # older jax without pipeline_mode: accept default buffering
        return pl.BlockSpec(shape, idx)


def _choose_tm(B, padded, budget):
    """Pick the batch tile per-generation from the VMEM budget."""
    if B <= 128:
        # Tiny batch: one 8-aligned tile; padding to 128+ rows would only add
        # wasted MXU work for a kernel that is launch-overhead dominated anyway.
        return max(8, _round_up(B, 8))
    tm = 128
    for cand in (512, 256, 128):
        if _vmem_footprint_bytes(cand, padded) <= budget:
            tm = cand
            break
    # Guarantee >= 2 grid steps so both v7x TensorCores get work (and the
    # input/output pipeline actually pipelines).
    while tm > 128 and pl.cdiv(B, tm) < 2:
        tm //= 2
    return tm


def _make_fused_mlp_kernel(num_layers):
    """Kernel computing the whole MLP on one batch tile.

    refs layout: (x_ref, w0, b0, w1, b1, ..., w_{L-1}, b_{L-1}, o_ref)
      x  : (tm, In_pad)        bf16
      wl : (Dl_pad, Dl+1_pad)  bf16   (transposed vs. PyTorch nn.Linear)
      bl : (1, Dl+1_pad)       f32
      o  : (tm, Out_pad)       f32
    """

    def kernel(x_ref, *refs):
        o_ref = refs[-1]
        wb = refs[:-1]
        h = x_ref[...]  # bf16 activations live in vregs/VMEM the whole time
        for l in range(num_layers):
            w = wb[2 * l][...]
            b = wb[2 * l + 1][...]  # (1, Out_pad) f32, broadcasts over batch rows
            # NOTE: for very wide hidden layers (tm * W_max f32 accumulator of
            # several MiB) this should chunk the N dimension with an inner
            # fori_loop to bound live vregs; not needed at these widths.
            acc = jnp.dot(h, w, preferred_element_type=jnp.float32) + b
            if l < num_layers - 1:
                # ReLU + downcast fused; bf16 feeds the next MXU matmul.
                h = jnp.maximum(acc, 0.0).astype(jnp.bfloat16)
            else:
                # Final layer: NO ReLU (matches projection_net.forward).
                o_ref[...] = acc.astype(o_ref.dtype)

    return kernel


def _full_forward(x, flat_params, *, dims, padded):
    """Pad -> fused MLP pallas_call -> slice, all inside one jit."""
    B, In = x.shape
    assert In == dims[0]
    num_layers = len(flat_params) // 2
    In_pad, Out_pad = padded[0], padded[-1]

    cap = _vmem_capacity_bytes()
    budget = max(cap - _VMEM_HEADROOM, cap // 2)
    tm = _choose_tm(B, padded, budget)

    footprint = _vmem_footprint_bytes(tm, padded)
    if footprint > budget:
        # TODO(synk): fall back to a per-layer K/N-tiled weight pipeline when all
        # weights cannot stay resident in VMEM (relevant on v7x's 64 MiB/TC).
        raise ValueError(
            f"projection_net fused kernel needs ~{footprint >> 20} MiB VMEM "
            f"(all weights resident) but only ~{budget >> 20} MiB is available "
            f"on this chip."
        )

    B_pad = _round_up(B, tm)
    grid = (B_pad // tm,)

    xp = jnp.zeros((B_pad, In_pad), jnp.bfloat16)
    xp = xp.at[:B, :In].set(x.astype(jnp.bfloat16))

    in_specs = [pl.BlockSpec((tm, In_pad), lambda i: (i, 0))]
    for l in range(num_layers):
        in_specs.append(_resident_spec(flat_params[2 * l].shape))
        in_specs.append(_resident_spec(flat_params[2 * l + 1].shape))

    yp = pl.pallas_call(
        _make_fused_mlp_kernel(num_layers),
        out_shape=jax.ShapeDtypeStruct((B_pad, Out_pad), jnp.float32),
        grid=grid,
        in_specs=in_specs,
        out_specs=pl.BlockSpec((tm, Out_pad), lambda i: (i, 0)),
        compiler_params=pltpu.CompilerParams(
            dimension_semantics=("parallel",),
            vmem_limit_bytes=int(budget),
        ),
    )(xp, *flat_params)

    return yp[:B, : dims[-1]]  # f32, un-padded


def _init_linear(key, fan_in, fan_out):
    """Deterministic init mimicking torch.nn.Linear default (uniform +-1/sqrt(fan_in))."""
    kw, kb = jax.random.split(key)
    bound = 1.0 / math.sqrt(fan_in)
    w = jax.random.uniform(kw, (fan_in, fan_out), jnp.float32, -bound, bound)
    b = jax.random.uniform(kb, (1, fan_out), jnp.float32, -bound, bound)
    return w, b


class ProjectionNet:
    """JAX/Pallas port of projection_net:
       x = relu(input_layer(x))
       for layer in hidden_layers: x = relu(layer(x))
       return output_layer(x)            # no final ReLU
    """

    def __init__(self, inputs, outputs, num_hidden, hidden_size, key):
        num_hidden = len(hidden_size)  # PyTorch module ignores the num_hidden arg too
        dims = [inputs] + list(hidden_size) + [outputs]
        self.dims = dims
        # Lane-dense padded feature dims (multiples of 128) so every store is an
        # unmasked full-lane vst; the real output is sliced out in the wrapper.
        self.padded = [_round_up(d, 128) for d in dims]

        keys = jax.random.split(key, len(dims) - 1)
        flat = []
        for i in range(len(dims) - 1):
            w, b = _init_linear(keys[i], dims[i], dims[i + 1])
            wp = jnp.zeros((self.padded[i], self.padded[i + 1]), jnp.bfloat16)
            wp = wp.at[: dims[i], : dims[i + 1]].set(w.astype(jnp.bfloat16))
            bp = jnp.zeros((1, self.padded[i + 1]), jnp.float32)
            bp = bp.at[:, : dims[i + 1]].set(b)
            flat.extend([wp, bp])
        self.flat_params = tuple(flat)

        # One jit for the whole forward: pad + fused pallas_call + slice.
        self._forward = jax.jit(
            partial(_full_forward, dims=tuple(dims), padded=tuple(self.padded))
        )

    def __call__(self, x):
        return self._forward(x, self.flat_params)


def _reference_forward(x, flat_params, dims, padded):
    """Pure-JAX reference with identical bf16/f32 dtype choices."""
    B, In = x.shape
    h = jnp.zeros((_round_up(B, 8), padded[0]), jnp.bfloat16).at[:B, :In].set(
        x.astype(jnp.bfloat16)
    )
    num_layers = len(flat_params) // 2
    out = None
    for l in range(num_layers):
        w = flat_params[2 * l]
        b = flat_params[2 * l + 1]
        acc = jnp.dot(h, w, preferred_element_type=jnp.float32) + b
        if l < num_layers - 1:
            h = jnp.maximum(acc, 0.0).astype(jnp.bfloat16)
        else:
            out = acc
    return out[:B, : dims[-1]]


if __name__ == "__main__":
    key = jax.random.PRNGKey(0)
    k_net, k_x = jax.random.split(key)

    batch = 8
    inputs = 16
    hidden_size = [32, 32]
    outputs = 4

    net = ProjectionNet(inputs, outputs, len(hidden_size), hidden_size, k_net)
    x = jax.random.normal(k_x, (batch, inputs), jnp.float32)

    y = net(x)
    jax.block_until_ready(y)

    assert y.shape == (batch, outputs)
    assert bool(jnp.all(jnp.isfinite(y)))

    y_ref = _reference_forward(x, net.flat_params, net.dims, net.padded)
    assert bool(jnp.allclose(y, y_ref, atol=1e-2, rtol=1e-2))

    print("KERNEL_OK")
</pallas_src>

<mosaic_0001>
module attributes {stable_mosaic.version = 11 : i64} {
  func.func @kernel(%arg0: i32, %arg1: memref<8x128xbf16, #tpu.memory_space<vmem>>, %arg2: memref<128x128xbf16, #tpu.memory_space<vmem>>, %arg3: memref<1x128xf32, #tpu.memory_space<vmem>>, %arg4: memref<128x128xbf16, #tpu.memory_space<vmem>>, %arg5: memref<1x128xf32, #tpu.memory_space<vmem>>, %arg6: memref<128x128xbf16, #tpu.memory_space<vmem>>, %arg7: memref<1x128xf32, #tpu.memory_space<vmem>>, %arg8: memref<8x128xf32, #tpu.memory_space<vmem>>) attributes {dimension_semantics = [#tpu.dimension_semantics<parallel>], iteration_bounds = array<i64: 1>, scalar_prefetch = 0 : i64, scratch_operands = 0 : i64, tpu.core_type = #tpu.core_type<tc>, window_params = [{transform_indices = @transform_0, window_bounds = array<i64: 8, 128>}, {pipeline_mode = #tpu.pipeline_mode<synchronous>, transform_indices = @transform_1, window_bounds = array<i64: 128, 128>}, {pipeline_mode = #tpu.pipeline_mode<synchronous>, transform_indices = @transform_2, window_bounds = array<i64: 1, 128>}, {pipeline_mode = #tpu.pipeline_mode<synchronous>, transform_indices = @transform_3, window_bounds = array<i64: 128, 128>}, {pipeline_mode = #tpu.pipeline_mode<synchronous>, transform_indices = @transform_4, window_bounds = array<i64: 1, 128>}, {pipeline_mode = #tpu.pipeline_mode<synchronous>, transform_indices = @transform_5, window_bounds = array<i64: 128, 128>}, {pipeline_mode = #tpu.pipeline_mode<synchronous>, transform_indices = @transform_6, window_bounds = array<i64: 1, 128>}, {transform_indices = @transform_7, window_bounds = array<i64: 8, 128>}]} {
    %c0 = arith.constant 0 : index
    %c0_0 = arith.constant 0 : index
    %0 = vector.load %arg1[%c0, %c0_0] : memref<8x128xbf16, #tpu.memory_space<vmem>>, vector<8x128xbf16>
    %c0_1 = arith.constant 0 : index
    %c0_2 = arith.constant 0 : index
    %1 = vector.load %arg2[%c0_1, %c0_2] : memref<128x128xbf16, #tpu.memory_space<vmem>>, vector<128x128xbf16>
    %c0_3 = arith.constant 0 : index
    %c0_4 = arith.constant 0 : index
    %2 = vector.load %arg3[%c0_3, %c0_4] : memref<1x128xf32, #tpu.memory_space<vmem>>, vector<1x128xf32>
    %cst = arith.constant dense<0.000000e+00> : vector<8x128xf32>
    %3 = tpu.matmul %0, %1, %cst {dimension_numbers = #tpu.dot_dimension_numbers<[1], [0], [0], [1], [0, 0, 1, 1], [], []>} : vector<8x128xbf16>, vector<128x128xbf16>, vector<8x128xf32> -> vector<8x128xf32>
    %4 = vector.broadcast %2 : vector<1x128xf32> to vector<8x128xf32>
    %5 = arith.addf %3, %4 : vector<8x128xf32>
    %cst_5 = arith.constant 0.000000e+00 : f32
    %6 = vector.broadcast %cst_5 : f32 to vector<8x128xf32>
    %7 = arith.maximumf %5, %6 : vector<8x128xf32>
    %8 = arith.truncf %7 : vector<8x128xf32> to vector<8x128xbf16>
    %c0_6 = arith.constant 0 : index
    %c0_7 = arith.constant 0 : index
    %9 = vector.load %arg4[%c0_6, %c0_7] : memref<128x128xbf16, #tpu.memory_space<vmem>>, vector<128x128xbf16>
    %c0_8 = arith.constant 0 : index
    %c0_9 = arith.constant 0 : index
    %10 = vector.load %arg5[%c0_8, %c0_9] : memref<1x128xf32, #tpu.memory_space<vmem>>, vector<1x128xf32>
    %cst_10 = arith.constant dense<0.000000e+00> : vector<8x128xf32>
    %11 = tpu.matmul %8, %9, %cst_10 {dimension_numbers = #tpu.dot_dimension_numbers<[1], [0], [0], [1], [0, 0, 1, 1], [], []>} : vector<8x128xbf16>, vector<128x128xbf16>, vector<8x128xf32> -> vector<8x128xf32>
    %12 = vector.broadcast %10 : vector<1x128xf32> to vector<8x128xf32>
    %13 = arith.addf %11, %12 : vector<8x128xf32>
    %cst_11 = arith.constant 0.000000e+00 : f32
    %14 = vector.broadcast %cst_11 : f32 to vector<8x128xf32>
    %15 = arith.maximumf %13, %14 : vector<8x128xf32>
    %16 = arith.truncf %15 : vector<8x128xf32> to vector<8x128xbf16>
    %c0_12 = arith.constant 0 : index
    %c0_13 = arith.constant 0 : index
    %17 = vector.load %arg6[%c0_12, %c0_13] : memref<128x128xbf16, #tpu.memory_space<vmem>>, vector<128x128xbf16>
    %c0_14 = arith.constant 0 : index
    %c0_15 = arith.constant 0 : index
    %18 = vector.load %arg7[%c0_14, %c0_15] : memref<1x128xf32, #tpu.memory_space<vmem>>, vector<1x128xf32>
    %cst_16 = arith.constant dense<0.000000e+00> : vector<8x128xf32>
    %19 = tpu.matmul %16, %17, %cst_16 {dimension_numbers = #tpu.dot_dimension_numbers<[1], [0], [0], [1], [0, 0, 1, 1], [], []>} : vector<8x128xbf16>, vector<128x128xbf16>, vector<8x128xf32> -> vector<8x128xf32>
    %20 = vector.broadcast %18 : vector<1x128xf32> to vector<8x128xf32>
    %21 = arith.addf %19, %20 : vector<8x128xf32>
    %c0_17 = arith.constant 0 : index
    %c0_18 = arith.constant 0 : index
    %22 = vector.load %arg8[%c0_17, %c0_18] : memref<8x128xf32, #tpu.memory_space<vmem>>, vector<8x128xf32>
    tpu.vector_store %arg8[%c0_17, %c0_18], %21 {strides = array<i32>} : memref<8x128xf32, #tpu.memory_space<vmem>>, vector<8x128xf32>,
    return
  }
  func.func @transform_0(%arg0: i32) -> (i32, i32) {
    %c0_i32 = arith.constant 0 : i32
    %c0_i32_0 = arith.constant 0 : i32
    return %arg0, %c0_i32 : i32, i32
  }
  func.func @transform_1(%arg0: i32) -> (i32, i32) {
    %c0_i32 = arith.constant 0 : i32
    %c0_i32_0 = arith.constant 0 : i32
    %c0_i32_1 = arith.constant 0 : i32
    return %c0_i32, %c0_i32_0 : i32, i32
  }
  func.func @transform_2(%arg0: i32) -> (i32, i32) {
    %c0_i32 = arith.constant 0 : i32
    %c0_i32_0 = arith.constant 0 : i32
    %c0_i32_1 = arith.constant 0 : i32
    return %c0_i32, %c0_i32_0 : i32, i32
  }
  func.func @transform_3(%arg0: i32) -> (i32, i32) {
    %c0_i32 = arith.constant 0 : i32
    %c0_i32_0 = arith.constant 0 : i32
    %c0_i32_1 = arith.constant 0 : i32
    return %c0_i32, %c0_i32_0 : i32, i32
  }
  func.func @transform_4(%arg0: i32) -> (i32, i32) {
    %c0_i32 = arith.constant 0 : i32
    %c0_i32_0 = arith.constant 0 : i32
    %c0_i32_1 = arith.constant 0 : i32
    return %c0_i32, %c0_i32_0 : i32, i32
  }
  func.func @transform_5(%arg0: i32) -> (i32, i32) {
    %c0_i32 = arith.constant 0 : i32
    %c0_i32_0 = arith.constant 0 : i32
    %c0_i32_1 = arith.constant 0 : i32
    return %c0_i32, %c0_i32_0 : i32, i32
  }
  func.func @transform_6(%arg0: i32) -> (i32, i32) {
    %c0_i32 = arith.constant 0 : i32
    %c0_i32_0 = arith.constant 0 : i32
    %c0_i32_1 = arith.constant 0 : i32
    return %c0_i32, %c0_i32_0 : i32, i32
  }
  func.func @transform_7(%arg0: i32) -> (i32, i32) {
    %c0_i32 = arith.constant 0 : i32
    %c0_i32_0 = arith.constant 0 : i32
    return %arg0, %c0_i32 : i32, i32
  }
}

</mosaic_0001>

<bundles_post_ra>
// kernel: _full_forward.1
= control target key start
LH: loop header
LB: loop body
LE: loop exit
PB: predicated region body
PF: predicated region fallthrough
CT: control target
= control target key end

     0   :  { %12 = vsyncpa [#allocation3], 0  ;;  %s772_s0 = inlined_call_operand.vmem [shape: bf16[8,128], index: 0, kind: input, shape index: {}]   ;;  %s773_s1 = inlined_call_operand.hbm [shape: bf16[128,128], index: 1, kind: input, shape index: {}]   ;;  %s774_s2 = inlined_call_operand.vmem [shape: f32[1,128], index: 2, kind: input, shape index: {}]   ;;  %s775_s3 = inlined_call_operand.hbm [shape: bf16[128,128], index: 3, kind: input, shape index: {}]   ;;  %s776_s4 = inlined_call_operand.vmem [shape: f32[1,128], index: 4, kind: input, shape index: {}]   ;;  %s777_s5 = inlined_call_operand.hbm [shape: bf16[128,128], index: 5, kind: input, shape index: {}]   ;;  %s778_s6 = inlined_call_operand.vmem [shape: f32[1,128], index: 6, kind: input, shape index: {}]   ;;  %s779_s7 = inlined_call_operand.vmem [shape: f32[8,128], index: 7, kind: output, shape index: {}]  }
   0x1   :  { %13 = vsyncpa [#allocation5], 0  ;;  %s628_s24 = smov [#allocation4]   ;;  %s629_s26 = smov [#allocation2]  }
   0x2   :  { %s35_s25 = sshll.u32 %s628_s24, 4  ;;  %s21_s27 = sshll.u32 %s629_s26, 4  ;;  %s36_s25 = int_to_ptr.vmem [resolvable:$true] %s35_s25  ;;  %s675_s27 = int_to_ptr.vmem [resolvable:$true] %s21_s27 }
   0x3   :  { %s558_s30 = scalar_lea.hbm %s775_s3, 1024 }
   0x4   :  { %p559_p0 = scmp.ne.s32.totalorder %s775_s3, %s558_s30  ;;  %p562_p1 = scmp.lt.u32.totalorder %s558_s30, %s775_s3 }
   0x6   :  { %p564_p2 = pnand %p562_p1, %p559_p0 }
   0x8   :  { %567 = shalt.err (!%p564_p2)
}
   0x9   :  { %s568_s12 = scalar_lea.vmem %s36_s25, 1024  ;;  %p573_p4 = scmp.lt.s32.totalorder %s36_s25, %s36_s25 }
   0xa   :  { %p569_p3 = scmp.ne.s32.totalorder %s36_s25, %s568_s12  ;;  %p574_p5 = scmp.lt.s32.totalorder %s568_s12, %s568_s12 }
   0xc   :  { %p575_p6 = por %p574_p5, %p573_p4 }
   0xe   :  { %p576_p7 = pnand %p575_p6, %p569_p3 }
  0x10   :  { %579 = shalt.err (!%p576_p7)
}
  0x11   :  { %s630_s13 = smov 64   ;;  %s631_s14 = smov 4  }
  0x12   :  { %41 = dma.hbm_to_vmem [thread:$0]  %s775_s3, 1024, %s36_s25, [#allocation5], %s630_s13, %s630_s13, %s631_s14  }
  0x13   :  { %s580_s19 = scalar_lea.hbm %s773_s1, 1024 }
  0x14   :  { %p581_p8 = scmp.ne.s32.totalorder %s773_s1, %s580_s19  ;;  %p584_p9 = scmp.lt.u32.totalorder %s580_s19, %s773_s1 }
  0x16   :  { %p586_p10 = pnand %p584_p9, %p581_p8 }
  0x18   :  { %589 = shalt.err (!%p586_p10)
}
  0x19   :  { %s590_s24 = scalar_lea.vmem %s675_s27, 1024  ;;  %p595_p12 = scmp.lt.s32.totalorder %s675_s27, %s675_s27 }
  0x1a   :  { %p591_p11 = scmp.ne.s32.totalorder %s675_s27, %s590_s24  ;;  %p596_p13 = scmp.lt.s32.totalorder %s590_s24, %s590_s24 }
  0x1c   :  { %p597_p0 = por %p596_p13, %p595_p12 }
  0x1e   :  { %p598_p1 = pnand %p597_p0, %p591_p11 }
  0x20   :  { %601 = shalt.err (!%p598_p1)
}
  0x21   :  { %27 = dma.hbm_to_vmem [thread:$0]  %s773_s1, 1024, %s675_s27, [#allocation3], %s630_s13, %s630_s13, %s631_s14  }
  0x22   :  { %s632_s26 = smov [#allocation6]   ;;  %s602_s8 = scalar_lea.hbm %s777_s5, 1024 }
  0x23   :  { %s49_s28 = sshll.u32 %s632_s26, 4  ;;  %p603_p2 = scmp.ne.s32.totalorder %s777_s5, %s602_s8  ;;  %s50_s28 = int_to_ptr.vmem [resolvable:$true] %s49_s28 }
  0x24   :  { %p606_p3 = scmp.lt.u32.totalorder %s602_s8, %s777_s5 }
  0x26   :  { %p608_p4 = pnand %p606_p3, %p603_p2 }
  0x28   :  { %611 = shalt.err (!%p608_p4)
}
  0x29   :  { %s612_s15 = scalar_lea.vmem %s50_s28, 1024  ;;  %p617_p6 = scmp.lt.s32.totalorder %s50_s28, %s50_s28 }
  0x2a   :  { %p613_p5 = scmp.ne.s32.totalorder %s50_s28, %s612_s15  ;;  %p618_p7 = scmp.lt.s32.totalorder %s612_s15, %s612_s15 }
  0x2c   :  { %p619_p8 = por %p618_p7, %p617_p6 }
  0x2e   :  { %p620_p9 = pnand %p619_p8, %p613_p5 }
  0x30   :  { %623 = shalt.err (!%p620_p9)
}
  0x31   :  { %55 = dma.hbm_to_vmem [thread:$0]  %s777_s5, 1024, %s50_s28, [#allocation5], %s630_s13, %s630_s13, %s631_s14  }
  0x32   :  { %624 = dma.done.wait [#allocation3], 1024  }
  0x33   :  { %625 = vsyncadd [#allocation3], 4294966272 }
  0x34   :  { %626 = dma.done.wait [#allocation5], 2048  }
  0x35   :  { %627 = vsyncadd [#allocation5], 4294965248  ;;  %v633_v0 = vmov 0.0   ;;  %vm634_vm0 = vmmov 0   ;;  %v534_v1 = vld [vmem:[#allocation2] sm:$0xff]   ;;  %v535_v2 = vld [vmem:[#allocation2 + $0x8] sm:$0xff]  }
  0x36   :  { %467 = vmatprep.subr.bf16.mxu0 %v633_v0  ;;  %483 = vmatprep.mubr.msk.bf16.mxu0 %vm634_vm0, %v633_v0  ;;  %v536_v3 = vld [vmem:[#allocation2 + $0x10] sm:$0xff]   ;;  %v542_v4 = vld [vmem:[#allocation4] sm:$0xff]   ;;  %v537_v5 = vld [vmem:[#allocation2 + $0x18] sm:$0xff]  }
  0x37   :  { %487 = vmatprep.subr.bf16.mxu1 %v633_v0  ;;  %503 = vmatprep.mubr.msk.bf16.mxu1 %vm634_vm0, %v633_v0  ;;  %v543_v6 = vld [vmem:[#allocation4 + $0x8] sm:$0xff]   ;;  %v538_v7 = vld [vmem:[#allocation2 + $0x20] sm:$0xff]   ;;  %v544_v8 = vld [vmem:[#allocation4 + $0x10] sm:$0xff]  }
  0x38   :  { %468 = vmatpush3.bf16.msra.mxu0 %v534_v1  ;;  %488 = vmatpush3.bf16.msra.mxu1 %v542_v4  ;;  %v539_v9 = vld [vmem:[#allocation2 + $0x28] sm:$0xff]   ;;  %v545_v10 = vld [vmem:[#allocation4 + $0x18] sm:$0xff]   ;;  %v540_v11 = vld [vmem:[#allocation2 + $0x30] sm:$0xff]  }
  0x39   :  { %469 = vmatprep.subr.bf16.mxu0 %v633_v0  ;;  %489 = vmatprep.subr.bf16.mxu1 %v633_v0  ;;  %v546_v12 = vld [vmem:[#allocation4 + $0x20] sm:$0xff]   ;;  %v541_v13 = vld [vmem:[#allocation2 + $0x38] sm:$0xff]   ;;  %v547_v14 = vld [vmem:[#allocation4 + $0x28] sm:$0xff]  }
  0x3a   :  { %v68_v15 = vld [vmem:[%s772_s0] sm:$0xf]  ;;  %v548_v16 = vld [vmem:[#allocation4 + $0x30] sm:$0xff]   ;;  %v549_v17 = vld [vmem:[#allocation4 + $0x38] sm:$0xff]  }
  0x3b   :  { %v550_v18 = vld [vmem:[#allocation6] sm:$0xff]   ;;  %v551_v19 = vld [vmem:[#allocation6 + $0x8] sm:$0xff]   ;;  %v552_v20 = vld [vmem:[#allocation6 + $0x10] sm:$0xff]  }
  0x3c   :  { %470 = vmatpush3.bf16.msra.mxu0 %v535_v2  ;;  %490 = vmatpush3.bf16.msra.mxu1 %v543_v6  ;;  %v553_v21 = vld [vmem:[#allocation6 + $0x18] sm:$0xff]   ;;  %v554_v22 = vld [vmem:[#allocation6 + $0x20] sm:$0xff]   ;;  %v555_v23 = vld [vmem:[#allocation6 + $0x28] sm:$0xff]  }
  0x3d   :  { %471 = vmatprep.subr.bf16.mxu0 %v633_v0  ;;  %491 = vmatprep.subr.bf16.mxu1 %v633_v0  ;;  %v413_v24 = vld [vmem:[%s774_s2] ss:$0 sm:$0xff]  ;;  %v556_v32 = vld [vmem:[#allocation6 + $0x30] sm:$0xff]   ;;  %v557_v33 = vld [vmem:[#allocation6 + $0x38] sm:$0xff]  }
  0x3e   :  { %v422_v34 = vld [vmem:[%s776_s4] ss:$0 sm:$0xff] }
  0x3f   :  { %v431_v42 = vld [vmem:[%s778_s6] ss:$0 sm:$0xff] }
  0x40   :  { %472 = vmatpush3.bf16.msra.mxu0 %v536_v3  ;;  %492 = vmatpush3.bf16.msra.mxu1 %v544_v8 }
  0x41   :  { %473 = vmatprep.subr.bf16.mxu0 %v633_v0  ;;  %493 = vmatprep.subr.bf16.mxu1 %v633_v0 }
  0x44   :  { %474 = vmatpush3.bf16.msra.mxu0 %v537_v5  ;;  %494 = vmatpush3.bf16.msra.mxu1 %v545_v10 }
  0x45   :  { %475 = vmatprep.subr.bf16.mxu0 %v633_v0  ;;  %495 = vmatprep.subr.bf16.mxu1 %v633_v0 }
  0x48   :  { %476 = vmatpush3.bf16.msra.mxu0 %v538_v7  ;;  %496 = vmatpush3.bf16.msra.mxu1 %v546_v12 }
  0x49   :  { %477 = vmatprep.subr.bf16.mxu0 %v633_v0  ;;  %497 = vmatprep.subr.bf16.mxu1 %v633_v0 }
  0x4c   :  { %478 = vmatpush3.bf16.msra.mxu0 %v539_v9  ;;  %498 = vmatpush3.bf16.msra.mxu1 %v547_v14 }
  0x4d   :  { %479 = vmatprep.subr.bf16.mxu0 %v633_v0  ;;  %499 = vmatprep.subr.bf16.mxu1 %v633_v0 }
  0x50   :  { %480 = vmatpush3.bf16.msra.mxu0 %v540_v11  ;;  %500 = vmatpush3.bf16.msra.mxu1 %v548_v16 }
  0x51   :  { %481 = vmatprep.subr.bf16.mxu0 %v633_v0  ;;  %501 = vmatprep.subr.bf16.mxu1 %v633_v0 }
  0x54   :  { %482 = vmatpush3.bf16.msra.mxu0 %v541_v13  ;;  %502 = vmatpush3.bf16.msra.mxu1 %v549_v17 }
  0x55   :  { %507 = vmatprep.subr.bf16.mxu0 %v633_v0 }
  0x57   :  { %484 = vmatmul.mubr.bf16.vlgmr.msra.gmra.mrb[0].mxu0 %v68_v15 }
  0x58   :  { %523 = vmatprep.mubr.msk.bf16.mxu0 %vm634_vm0, %v633_v0  ;;  %508 = vmatpush3.bf16.msra.mxu0 %v550_v18 }
  0x59   :  { %509 = vmatprep.subr.bf16.mxu0 %v633_v0 }
  0x5c   :  { %510 = vmatpush3.bf16.msra.mxu0 %v551_v19 }
  0x5d   :  { %511 = vmatprep.subr.bf16.mxu0 %v633_v0 }
  0x60   :  { %512 = vmatpush3.bf16.msra.mxu0 %v552_v20 }
  0x61   :  { %513 = vmatprep.subr.bf16.mxu0 %v633_v0 }
  0x64   :  { %514 = vmatpush3.bf16.msra.mxu0 %v553_v21 }
  0x65   :  { %515 = vmatprep.subr.bf16.mxu0 %v633_v0 }
  0x68   :  { %516 = vmatpush3.bf16.msra.mxu0 %v554_v22 }
  0x69   :  { %517 = vmatprep.subr.bf16.mxu0 %v633_v0 }
  0x6c   :  { %518 = vmatpush3.bf16.msra.mxu0 %v555_v23 }
  0x6d   :  { %519 = vmatprep.subr.bf16.mxu0 %v633_v0 }
  0x70   :  { %520 = vmatpush3.bf16.msra.mxu0 %v556_v32 }
  0x71   :  { %521 = vmatprep.subr.bf16.mxu0 %v633_v0 }
  0x74   :  { %522 = vmatpush3.bf16.msra.mxu0 %v557_v33 }
 0x12a   :  { %v174_v25 = vpop.f32.mrb[0].mxu0 }
 0x12b   :  { %v175_v26 = vadd.f32 %v413_v24, %v174_v25  ;;  %v485_v27 = vpop.f32.mrb[1].mxu0 }
 0x12c   :  { %v177_v28 = vpop.f32.mrb[2].mxu0 }
 0x12d   :  { %v180_v29 = vmax.f32 %v175_v26, 0.0  ;;  %v486_v30 = vpop.f32.mrb[3].mxu0 }
 0x12f   :  { %v181_v31 = vpack.c.bf16 %v180_v29, %v180_v29 }
 0x131   :  { %504 = vmatmul.mubr.bf16.vlgmr.msra.gmra.mrb[0].mxu1 %v181_v31 }
 0x204   :  { %v287_v35 = vpop.f32.mrb[0].mxu1 }
 0x205   :  { %v288_v36 = vadd.f32 %v422_v34, %v287_v35  ;;  %v505_v37 = vpop.f32.mrb[1].mxu1 }
 0x206   :  { %v290_v38 = vpop.f32.mrb[2].mxu1 }
 0x207   :  { %v293_v39 = vmax.f32 %v288_v36, 0.0  ;;  %v506_v40 = vpop.f32.mrb[3].mxu1 }
 0x209   :  { %v294_v41 = vpack.c.bf16 %v293_v39, %v293_v39 }
 0x20b   :  { %524 = vmatmul.mubr.bf16.vlgmr.msra.gmra.mrb[4].mxu0 %v294_v41 }
 0x2de   :  { %v400_v43 = vpop.f32.mrb[4].mxu0 }
 0x2df   :  { %v401_v44 = vadd.f32 %v431_v42, %v400_v43  ;;  %v525_v45 = vpop.f32.mrb[5].mxu0 }
 0x2e0   :  { %v403_v46 = vpop.f32.mrb[6].mxu0 }
 0x2e1   :  { %406 = vst [vmem:[%s779_s7] sm:$0xff] %v401_v44  ;;  %v526_v47 = vpop.f32.mrb[7].mxu0 }
 0x2e2   :  { %411 = vsyncpa [#allocation3], 1 }
 0x2e3   :  { %412 = vsyncpa [#allocation5], 1 }

</bundles_post_ra>
